<compile_context>
chip_gen: v5e
topology: v5e:2x2
jax: 0.10.0
libtpu: 0.0.40
codegen_flags: <defaults>
</compile_context>

<pallas_src>
import functools
import math

import jax
import jax.numpy as jnp
from jax import lax
from jax.experimental import pallas as pl
from jax.experimental.pallas import tpu as pltpu


def _linear_kernel(x_ref, w_ref, b_ref, o_ref, acc_ref, *, d_total, tk):
    # x_ref: [TB, TK] VMEM; w_ref: [1, TK] VMEM (lane-dense, batch-invariant);
    # b_ref: [1, 1] SMEM scalar; o_ref: [TB, 1] VMEM (resident across k);
    # acc_ref: [TB, 1] f32 VMEM scratch accumulator.
    k = pl.program_id(1)
    nk = pl.num_programs(1)

    @pl.when(k == 0)
    def _():
        acc_ref[...] = jnp.zeros_like(acc_ref)

    x = x_ref[...]
    w = w_ref[...]
    # VPU elementwise multiply + XLU lane reduce: both operands stay lane-dense.
    prod = x * w
    if d_total % tk != 0:
        # Ragged last K block: mask out-of-range lanes (their VMEM contents are
        # undefined).  Static check, so fully-divisible D pays nothing.
        lane = lax.broadcasted_iota(jnp.int32, prod.shape, dimension=1)
        prod = jnp.where(k * tk + lane < d_total, prod, 0.0)
    acc_ref[...] += jnp.sum(prod, axis=-1, keepdims=True)

    @pl.when(k == nk - 1)
    def _():
        # TODO(synk): lane-dense (1, TB) output blocks would replace the TB/8
        # masked vst.msk stores with TB/128 full-lane stores; skipped here to
        # avoid the (TB,1)->(1,TB) relayout since the output stream is <=1/64
        # of the input traffic.
        o_ref[...] = (acc_ref[...] + b_ref[0, 0]).astype(o_ref.dtype)


def _vmem_capacity_bytes():
    try:
        return int(pltpu.get_tpu_info().vmem_capacity_bytes)
    except Exception:
        return 64 * 1024 * 1024  # conservative: valid on every generation


def _choose_tiles(B, D):
    """Pick (TB, TK) for the [TB, TK] f32 x tile, sized by bytes against the
    chip's physical VMEM so tiles land in the multi-MiB sweet spot on
    v5e/v6e/v7x while staying comfortably double-buffered."""
    vmem_cap = _vmem_capacity_bytes()
    # Per-buffer x-tile target: ~1/6 of physical VMEM, capped at 16 MiB
    # (double-buffered x -> ~1/3 of VMEM; weight / output / acc are tiny).
    tile_target = min(16 << 20, vmem_cap // 6)

    # Feature tile: full D when that still allows >=1024 batch rows per tile,
    # otherwise a multiple of 128 (lane-dim BlockSpec constraint) and we
    # accumulate over the K grid axis.
    tk_cap = max(128, (tile_target // (4 * 1024)) // 128 * 128)
    tk = D if D <= tk_cap else tk_cap

    # Batch tile: fill the byte budget, multiple of 8 (sublane constraint),
    # clipped against B (full-extent block when B < 8).
    tb = max(8, (tile_target // (4 * tk)) // 8 * 8)
    if B <= 8:
        tb = B
    else:
        tb = min(tb, max(8, (B // 8) * 8))

    # v7x megacore: keep >= 2 batch tiles when halving still leaves multi-MiB
    # tiles, so the "parallel" axis can feed both TensorCores.
    if pl.cdiv(B, tb) == 1 and B * tk * 4 >= (8 << 20):
        tb = max(8, 8 * pl.cdiv(pl.cdiv(B, 2), 8))

    return tb, tk, vmem_cap


def linear_regression_forward(x_nchw, weight, bias):
    """Forward pass of LinearRegressionModel.

    x_nchw: [B, ...] float32 (flattened to [B, D], D = prod of trailing dims)
    weight: [1, D]   float32 (PyTorch nn.Linear weight)
    bias:   [1]      float32
    returns: [B, 1]  float32
    """
    B = x_nchw.shape[0]
    D = math.prod(x_nchw.shape[1:])
    x_flat = x_nchw.reshape(B, D)  # nn.Flatten()

    tb, tk, vmem_cap = _choose_tiles(B, D)
    nb = pl.cdiv(B, tb)
    nk = pl.cdiv(D, tk)
    vmem_limit = min((vmem_cap * 3) // 4, 96 * 1024 * 1024)

    w_row = weight.reshape(1, D)   # lane-dense, streamed over K, resident over batch
    b_smem = bias.reshape(1, 1)

    kernel = functools.partial(_linear_kernel, d_total=D, tk=tk)

    out = pl.pallas_call(
        kernel,
        out_shape=jax.ShapeDtypeStruct((B, 1), jnp.float32),
        grid_spec=pltpu.PrefetchScalarGridSpec(
            num_scalar_prefetch=0,
            grid=(nb, nk),                                    # reduction axis last
            in_specs=[
                pl.BlockSpec((tb, tk), lambda i, k: (i, k)),  # streamed x tiles
                pl.BlockSpec((1, tk), lambda i, k: (0, k)),   # weight: invariant over batch
                pl.BlockSpec(memory_space=pltpu.SMEM),        # scalar bias
            ],
            out_specs=pl.BlockSpec((tb, 1), lambda i, k: (i, 0)),
            scratch_shapes=[pltpu.VMEM((tb, 1), jnp.float32)],
        ),
        compiler_params=pltpu.CompilerParams(
            dimension_semantics=("parallel", "arbitrary"),
            vmem_limit_bytes=vmem_limit,
        ),
        cost_estimate=pl.CostEstimate(
            flops=2 * B * D,
            transcendentals=0,
            bytes_accessed=4 * B * D + 4 * D + 4 * B,
        ),
    )(x_flat, w_row, b_smem)

    return out


if __name__ == "__main__":
    key = jax.random.PRNGKey(0)
    k_x, k_w, k_b = jax.random.split(key, 3)

    # Small shapes consistent with Flatten + Linear; B=10 exercises the
    # ragged (no-pad) batch path.  C=4, H=W=4 -> D=64.
    B, C, H, W = 10, 4, 4, 4
    D = C * H * W

    x = jax.random.normal(k_x, (B, C, H, W), dtype=jnp.float32)

    # Deterministic init mimicking PyTorch nn.Linear: U(-1/sqrt(D), 1/sqrt(D))
    bound = 1.0 / (D ** 0.5)
    weight = jax.random.uniform(k_w, (1, D), minval=-bound, maxval=bound, dtype=jnp.float32)
    bias = jax.random.uniform(k_b, (1,), minval=-bound, maxval=bound, dtype=jnp.float32)

    pred = linear_regression_forward(x, weight, bias)
    pred = jax.block_until_ready(pred)

    # Reference check in plain JAX
    ref = x.reshape(B, D) @ weight.T + bias
    assert pred.shape == (B, 1)
    assert jnp.allclose(pred, ref, atol=1e-5, rtol=1e-5)

    print("KERNEL_OK")
</pallas_src>

<mosaic_0001>
module attributes {stable_mosaic.version = 11 : i64} {
  func.func @_linear_kernel(%arg0: i32, %arg1: i32, %arg2: memref<8x64xf32, #tpu.memory_space<vmem>>, %arg3: memref<1x64xf32, #tpu.memory_space<vmem>>, %arg4: memref<1x1xf32, #tpu.memory_space<smem>>, %arg5: memref<8x1xf32, #tpu.memory_space<vmem>>, %arg6: memref<8x1xf32, #tpu.memory_space<vmem>>) attributes {dimension_semantics = [#tpu.dimension_semantics<parallel>, #tpu.dimension_semantics<arbitrary>], iteration_bounds = array<i64: 2, 1>, scalar_prefetch = 0 : i64, scratch_operands = 1 : i64, tpu.core_type = #tpu.core_type<tc>, window_params = [{transform_indices = @transform_0, window_bounds = array<i64: 8, 64>}, {transform_indices = @transform_1, window_bounds = array<i64: 1, 64>}, {transform_indices = @transform_2, window_bounds = array<i64: 1, 1>}, {transform_indices = @transform_3, window_bounds = array<i64: 8, 1>}]} {
    %c0_i32 = arith.constant 0 : i32
    %0 = arith.cmpi eq, %arg1, %c0_i32 : i32
    %1 = arith.extui %0 : i1 to i32
    %c0_i32_0 = arith.constant 0 : i32
    %2 = arith.cmpi ne, %1, %c0_i32_0 : i32
    scf.if %2 {
      %cst_10 = arith.constant 0.000000e+00 : f32
      %15 = vector.broadcast %cst_10 : f32 to vector<8x1xf32>
      %c0_11 = arith.constant 0 : index
      %c0_12 = arith.constant 0 : index
      %16 = vector.load %arg6[%c0_11, %c0_12] : memref<8x1xf32, #tpu.memory_space<vmem>>, vector<8x1xf32>
      tpu.vector_store %arg6[%c0_11, %c0_12], %15 {strides = array<i32>} : memref<8x1xf32, #tpu.memory_space<vmem>>, vector<8x1xf32>,
    } else {
    }
    %c0 = arith.constant 0 : index
    %c0_1 = arith.constant 0 : index
    %3 = vector.load %arg2[%c0, %c0_1] : memref<8x64xf32, #tpu.memory_space<vmem>>, vector<8x64xf32>
    %c0_2 = arith.constant 0 : index
    %c0_3 = arith.constant 0 : index
    %4 = vector.load %arg3[%c0_2, %c0_3] : memref<1x64xf32, #tpu.memory_space<vmem>>, vector<1x64xf32>
    %5 = vector.broadcast %4 : vector<1x64xf32> to vector<8x64xf32>
    %6 = arith.mulf %3, %5 : vector<8x64xf32>
    %c0_4 = arith.constant 0 : index
    %c0_5 = arith.constant 0 : index
    %7 = vector.load %arg6[%c0_4, %c0_5] : memref<8x1xf32, #tpu.memory_space<vmem>>, vector<8x1xf32>
    %cst = arith.constant dense<0.000000e+00> : vector<8xf32>
    %8 = vector.multi_reduction <add>, %6, %cst [1] : vector<8x64xf32> to vector<8xf32>
    %9 = vector.shape_cast %8 : vector<8xf32> to vector<8x1xf32>
    %10 = arith.addf %7, %9 : vector<8x1xf32>
    %c0_6 = arith.constant 0 : index
    %c0_7 = arith.constant 0 : index
    %11 = vector.load %arg6[%c0_6, %c0_7] : memref<8x1xf32, #tpu.memory_space<vmem>>, vector<8x1xf32>
    tpu.vector_store %arg6[%c0_6, %c0_7], %10 {strides = array<i32>} : memref<8x1xf32, #tpu.memory_space<vmem>>, vector<8x1xf32>,
    %c0_i32_8 = arith.constant 0 : i32
    %12 = arith.cmpi eq, %arg1, %c0_i32_8 : i32
    %13 = arith.extui %12 : i1 to i32
    %c0_i32_9 = arith.constant 0 : i32
    %14 = arith.cmpi ne, %13, %c0_i32_9 : i32
    scf.if %14 {
      %c0_10 = arith.constant 0 : index
      %c0_11 = arith.constant 0 : index
      %15 = vector.load %arg6[%c0_10, %c0_11] : memref<8x1xf32, #tpu.memory_space<vmem>>, vector<8x1xf32>
      %c0_12 = arith.constant 0 : index
      %c0_13 = arith.constant 0 : index
      %16 = memref.load %arg4[%c0_12, %c0_13] : memref<1x1xf32, #tpu.memory_space<smem>>
      %17 = vector.broadcast %16 : f32 to vector<8x1xf32>
      %18 = arith.addf %15, %17 : vector<8x1xf32>
      %c0_14 = arith.constant 0 : index
      %c0_15 = arith.constant 0 : index
      %19 = vector.load %arg5[%c0_14, %c0_15] : memref<8x1xf32, #tpu.memory_space<vmem>>, vector<8x1xf32>
      tpu.vector_store %arg5[%c0_14, %c0_15], %18 {strides = array<i32>} : memref<8x1xf32, #tpu.memory_space<vmem>>, vector<8x1xf32>,
    } else {
    }
    return
  }
  func.func @transform_0(%arg0: i32, %arg1: i32) -> (i32, i32) {
    %c0_i32 = arith.constant 0 : i32
    return %arg0, %arg1 : i32, i32
  }
  func.func @transform_1(%arg0: i32, %arg1: i32) -> (i32, i32) {
    %c0_i32 = arith.constant 0 : i32
    %c0_i32_0 = arith.constant 0 : i32
    return %c0_i32, %arg1 : i32, i32
  }
  func.func @transform_2(%arg0: i32, %arg1: i32) -> (i32, i32) {
    %c0_i32 = arith.constant 0 : i32
    %c0_i32_0 = arith.constant 0 : i32
    %c0_i32_1 = arith.constant 0 : i32
    return %c0_i32, %c0_i32_0 : i32, i32
  }
  func.func @transform_3(%arg0: i32, %arg1: i32) -> (i32, i32) {
    %c0_i32 = arith.constant 0 : i32
    %c0_i32_0 = arith.constant 0 : i32
    return %arg0, %c0_i32 : i32, i32
  }
}

</mosaic_0001>

<bundles_post_ra>
// kernel: tpu_custom_call.1
= control target key start
LH: loop header
LB: loop body
LE: loop exit
PB: predicated region body
PF: predicated region fallthrough
CT: control target
= control target key end

     0   :  { %s601_s0 = inlined_call_operand.hbm [shape: f32[10,64], index: 0, kind: input, shape index: {}]   ;;  %s602_s1 = inlined_call_operand.vmem [shape: f32[1,64], index: 1, kind: input, shape index: {}]   ;;  %s603_s2 = inlined_call_operand.<no memory space> [shape: f32[1,1], index: 2, kind: input, shape index: {}]   ;;  %s604_s3 = inlined_call_operand.vmem [shape: f32[10,1], index: 3, kind: output, shape index: {}]  }
   0x1   :  { %8 = sst [smem:[#allocation3]] %s603_s2 }
   0x2   :  { %9 = vsyncpa [#allocation5], 0 }
   0x3   :  { %11 = vsyncpa [#allocation5 + $0x1], 0  ;;  %s507_s14 = smov 0   ;;  %s509_s15 = smov 0  }
   0x4   :  { %s511_s16 = smov 0   ;;  %s513_s17 = smov 0  }
   0x5   :  { %s515_s18 = smov 0   ;;  %s517_s19 = smov 0  }
   0x6 LB: > { %s332_s2 = sadd.s32 4294967295, %s481_s19   ;;  %s29_s20 = sadd.s32 1, %s477_s18  ;;  %s481_s19 = sphi %s517_s19, %s17_s19   ;;  %s477_s18 = sphi %s515_s18, %s611_s18   ;;  %s473_s17 = sphi %s513_s17, %s610_s17   ;;  %s469_s16 = sphi %s511_s16, %s609_s16   ;;  %s465_s15 = sphi %s509_s15, %s608_s15   ;;  %s461_s14 = sphi %s507_s14, %s607_s14  }
   0x7   : > { %p31_p0 = scmp.ge.s32.totalorder %s29_s20, 2  ;;  %s38_s21 = sadd.s32 1, %s469_s16 }
   0x8   : > { %p45_p1 = scmp.ne.s32.totalorder %s469_s16, %s465_s15  ;;  %p46_p2 = scmp.eq.s32.totalorder %s481_s19, 0 }
   0x9   : > { %s613_s20 = smov (%p31_p0, %s29_s20), 0  ;;  %p51_p4 = scmp.ne.s32.totalorder %s465_s15, %s461_s14 }
   0xa   : > { %p543_p3 = por %p46_p2, %p45_p1  ;;  %s33_s23 = ssub.s32 %s477_s18, %s613_s20 }
   0xb   : > { %p52_p5 = scmp.eq.s32.totalorder %s332_s2, 0  ;;  %p36_p6 = scmp.eq.s32.totalorder %s33_s23, 0 }
   0xc   : > { %p350_p8 = scmp.lt.s32.totalorder %s481_s19, 2  ;;  %s157_s26 = sand.u32 1, %s469_s16  }
   0xd   : > { %p550_p7 = por %p52_p5, %p51_p4  ;;  %s338_s27 = sshll.u32 %s477_s18, 3 }
   0xe   : > { %s556_s25 = scalar_select %p36_p6, %s469_s16, %s38_s21  }
   0xf   : > { %s337_s28 = sshll.u32 %s157_s26, 3  ;;  %s166_s4 = scalar_lea.hbm %s601_s0, %s338_s27 }
  0x10   : > { %s168_s5 = sshll.u32 %s166_s4, 4  ;;  %s161_s6 = scalar_lea.vmem [#allocation4], %s337_s28  ;;  %s169_s5 = int_to_ptr.hbm [resolvable:$true] %s168_s5 }
  0x11   : > { %s170_s7 = sshll.u32 %s161_s6, 4  ;;  %p347_p9 = pnand %p350_p8, %p543_p3  ;;  %s171_s7 = int_to_ptr.vmem [resolvable:$true] %s170_s7 }
  0x12   : > { %p339_p10 = scmp.ge.s32.totalorder %s481_s19, 1  ;;  %p175_p11 = scmp.lt.s32.totalorder %s481_s19, 3 }
  0x13   : > { %s158_s8 = scalar_lea.sflag [#allocation5], %s157_s26 }
  0x14   : > { %349 = dma.hbm_to_vmem [thread:$0]  (!%p347_p9), %s169_s5, 128, %s171_s7, %s158_s8  }
  0x15   : > { %p176_p12 = pnand %p339_p10, %p175_p11 }
  0x16   : > { %s181_s9 = sand.u32 (!%p176_p12), 1, %s465_s15  }
  0x17   : > { %179 = sbr.rel (%p176_p12) target bundleno = 162 (0xa2), region = 32  ;;  %s340_s10 = sshll.u32 (!%p176_p12), %s181_s9, 3 }
  0x18   : > { %s182_s11 = scalar_lea.sflag (!%p176_p12), [#allocation5], %s181_s9  ;;  %s185_s12 = scalar_lea.vmem (!%p176_p12), [#allocation4], %s340_s10 }
  0x1c   : > { %456 = dma.done.wait (%p550_p7), %s182_s11, 128  }
  0x1d   : > { %458 = vsyncadd (%p550_p7), %s182_s11, 4294967168  ;;  %vm222_vm0 = vcmask 7168   ;;  %v483_v0 = vmov 0.0   ;;  %v224_v1 = vld [vmem:[%s185_s12] sm:$0xff]  ;;  %v400_v2 = vld [vmem:[%s602_s1] ss:$0 sm:$0xff] }
  0x1e   : > { %223 = vst.msk [vmem:[#allocation2] sm:$0xff] %vm222_vm0, %v483_v0  ;;  %vm231_vm1 = vcmask 523264   ;;  %v229_v3 = vmul.f32 %v400_v2, %v224_v1  ;;  %p214_p13 = scmp.lt.s32.totalorder %s473_s17, 1  ;;  %s242_s2 = sld [smem:[#allocation3]] }
  0x20   : > { %v232_v4 = vsel %vm231_vm1, %v229_v3, 0.0  ;;  %s615_s17 = smov (!%p214_p13, %s473_s17), 1 }
  0x21   : > { %233 = vadd.xlane.f32.xlu0 %v232_v4  ;;  %s341_s21 = sshll.u32 %s615_s17, 3 }
  0x22   : > { %s217_s24 = scalar_lea.vmem %s604_s3, %s341_s21 }
  0x24   : > { %v243_v8 = vstv %s242_s2 }
  0x25   : > { %v230_v5 = vld [vmem:[#allocation2] sm:$0xff] }
  0x94   : > { %v234_v6 = vpop.xlane.xlu0 %233 }
  0x95   : > { %v235_v7 = vadd.f32 %v234_v6, %v230_v5 }
  0x97   : > { %237 = vst.msk [vmem:[#allocation2] sm:$0xff] %vm222_vm0, %v235_v7 }
  0x9e   : > { %v241_v9 = vld [vmem:[#allocation2] sm:$0xff] }
  0x9f   : > { %v244_v10 = vadd.f32 %v243_v8, %v241_v9 }
  0xa1   : > { %245 = vst.msk [vmem:[%s217_s24] sm:$0xff] %vm222_vm0, %v244_v10 }
  0xa2 PF: > { %s17_s19 = sadd.s32 1, %s481_s19   ;;  %s607_s14 = smov %s465_s15 }
  0xa3   : > { %p14_p0 = scmp.ge.s32.totalorder %s17_s19, 4   ;;  %s608_s15 = smov %s469_s16 }
  0xa4   : > { %s609_s16 = smov %s556_s25  ;;  %s610_s17 = smov %s477_s18 }
  0xa5   : > { %s611_s18 = smov %s613_s20  ;;  %16 = sbr.rel (!%p14_p0) target bundleno = 6 (0x6), region = 83 }
  0xaa   :  { %265 = vsyncpa [#allocation5], 1 }
  0xab   :  { %267 = vsyncpa [#allocation5 + $0x1], 1 }

</bundles_post_ra>
